<compile_context>
chip_gen: v7x
topology: tpu7x:2x2x1
jax: 0.10.0
libtpu: 0.0.40
codegen_flags: <defaults>
</compile_context>

<pallas_src>
from functools import partial

import jax
import jax.numpy as jnp
from jax.experimental import pallas as pl
from jax.experimental.pallas import tpu as pltpu


_LANE = 128
_FEATURES = 4


def _round_up(n, m):
    return (n + m - 1) // m * m


def _pick_batch_tile():
    # Bigger tiles amortize the ~0.35 us per-grid-step overhead.  131072 lanes
    # (2 MiB in + 0.5 MiB out per buffer, ~5 MiB double-buffered) is safe under
    # every generation's scoped-VMEM default; v7x-class parts (64 MiB VMEM/TC,
    # ~3.2 TB/s HBM) get 262144 lanes (~10 MiB of buffers, still well clear).
    try:
        info = pltpu.get_tpu_info()
        if info.vmem_capacity_bytes <= (64 << 20):
            return 262144
    except Exception:
        pass
    return 131072


def _credit_score_kernel(xt_ref, w_ref, b_ref, o_ref):
    # xt_ref: (4, TB) VMEM tile -- features on sublanes, batch on the lane axis.
    # w_ref : (4, 1) f32 VMEM   -- weight column, broadcast along lanes.
    # b_ref : (1,)   f32 SMEM scalar.
    # o_ref : (1, TB) f32 VMEM  -- lane-dense output tile.
    x = xt_ref[...].astype(jnp.float32)                 # widen bf16 in-kernel
    # One packed multiply + sublane reduction (XLU slot) instead of four
    # 1-sublane broadcast FMAs -> kernel stays HBM-bound, not VALU-bound.
    raw = jnp.sum(x * w_ref[...], axis=0, keepdims=True) + b_ref[0]
    o_ref[...] = jnp.clip(raw, 0.0, 1.0)                # torch.clamp(raw, 0, 1)


@partial(jax.jit, static_argnames=("features_major", "batch_tile", "min_pallas_batch"))
def linear_credit_score(x, weights, bias, *, features_major=False,
                        batch_tile=None, min_pallas_batch=8192):
    """clamp(x @ weights.T + bias, 0, 1).

    x: (B, 4) row-major (PyTorch layout) or (4, B) if features_major=True.
    weights: (1, 4) / (4,), bias: (1,) / scalar.  Returns (B, 1) float32.
    """
    if features_major:
        F, B = x.shape
    else:
        B, F = x.shape
    assert F == _FEATURES, "LinearCreditScoreModel expects 4 credit features"

    w_col = weights.reshape(_FEATURES, 1).astype(jnp.float32)   # (4, 1)
    b_flat = bias.reshape(-1)[:1].astype(jnp.float32)           # (1,)

    # Small-batch fallback: pallas_call launch + layout plumbing dominates.
    if B < min_pallas_batch:
        x2d = (x.T if features_major else x).astype(jnp.float32)
        raw = x2d @ w_col + b_flat[0]
        return jnp.clip(raw, 0.0, 1.0)

    # Feature-major view (4, B); the transpose (row-major callers only) and the
    # lane pad fuse into one XLA copy under jit.  Lane-only padding: multiple
    # of 128, never a full tile.
    xt = x if features_major else x.T
    b_pad = _round_up(B, _LANE)
    if b_pad != B:
        xt = jnp.pad(xt, ((0, 0), (0, b_pad - B)))

    # Batch tile: generation-aware max, shrunk so >=2 tiles exist (keeps both
    # v7x TensorCores busy); never larger than the padded batch.
    tb_max = batch_tile if batch_tile is not None else _pick_batch_tile()
    tb = max(_LANE, min(tb_max, _round_up(pl.cdiv(B, 2), _LANE)))
    tb = min(tb, b_pad)
    grid = (pl.cdiv(b_pad, tb),)        # last tile may be partial -> masked

    out = pl.pallas_call(
        _credit_score_kernel,
        out_shape=jax.ShapeDtypeStruct((1, b_pad), jnp.float32),
        grid=grid,
        in_specs=[
            pl.BlockSpec((_FEATURES, tb), lambda i: (0, i)),            # x tile (VMEM)
            pl.BlockSpec((_FEATURES, 1), lambda i: (0, 0)),             # weight column
            pl.BlockSpec(memory_space=pltpu.MemorySpace.SMEM),          # bias scalar
        ],
        out_specs=pl.BlockSpec((1, tb), lambda i: (0, i)),              # lane-dense out
        compiler_params=pltpu.CompilerParams(
            dimension_semantics=("parallel",),   # batch tiles shard across TCs
        ),
    )(xt, w_col, b_flat)

    # Slice only if lane padding happened; the (1,B)->(B,1) reshape is free.
    if b_pad != B:
        out = out[:, :B]
    return out.reshape(B, 1)


if __name__ == "__main__":
    # Deterministic parameters from the module's __init__.
    weights = jnp.array([[0.25, 0.2, 0.25, 0.3]], dtype=jnp.float32)   # (1, 4)
    bias = jnp.array([0.0], dtype=jnp.float32)                         # (1,)

    key = jax.random.PRNGKey(0)

    # 1) Tiny batch, Pallas path forced (default threshold would take the
    #    XLA fallback for B=8).
    x = jax.random.uniform(key, (8, 4), dtype=jnp.float32)
    ref = jnp.clip(x @ weights.T + bias, 0.0, 1.0)
    out = jax.block_until_ready(linear_credit_score(x, weights, bias, min_pallas_batch=0))
    assert out.shape == (8, 1)
    assert jnp.allclose(out, ref, atol=1e-6), (out, ref)

    # 2) Multi-tile grid with a partial last block (exercises lane masking).
    x2 = jax.random.uniform(jax.random.PRNGKey(0), (300, 4), dtype=jnp.float32)
    ref2 = jnp.clip(x2 @ weights.T + bias, 0.0, 1.0)
    out2 = jax.block_until_ready(linear_credit_score(x2, weights, bias, min_pallas_batch=0))
    assert out2.shape == (300, 1)
    assert jnp.allclose(out2, ref2, atol=1e-6)

    # 3) Feature-major fast path (no wrapper transpose copy).
    out3 = jax.block_until_ready(
        linear_credit_score(x2.T, weights, bias, features_major=True, min_pallas_batch=0))
    assert jnp.allclose(out3, ref2, atol=1e-6)

    # 4) Small-batch XLA fallback keeps identical semantics.
    out_fb = jax.block_until_ready(linear_credit_score(x, weights, bias))
    assert jnp.allclose(out_fb, ref, atol=1e-6)

    print("KERNEL_OK")
</pallas_src>

<mosaic_0001>
module attributes {stable_mosaic.version = 11 : i64} {
  func.func @_credit_score_kernel(%arg0: i32, %arg1: memref<4x128xf32, #tpu.memory_space<vmem>>, %arg2: memref<4x1xf32, #tpu.memory_space<vmem>>, %arg3: memref<1xf32, #tpu.memory_space<smem>>, %arg4: memref<1x128xf32, #tpu.memory_space<vmem>>) attributes {dimension_semantics = [#tpu.dimension_semantics<parallel>], iteration_bounds = array<i64: 1>, scalar_prefetch = 0 : i64, scratch_operands = 0 : i64, tpu.core_type = #tpu.core_type<tc>, window_params = [{transform_indices = @transform_0, window_bounds = array<i64: 4, 128>}, {pipeline_mode = #tpu.pipeline_mode<synchronous>, transform_indices = @transform_1, window_bounds = array<i64: 4, 1>}, {transform_indices = @transform_2, window_bounds = array<i64: 1>}, {transform_indices = @transform_3, window_bounds = array<i64: 1, 128>}]} {
    %c0 = arith.constant 0 : index
    %c0_0 = arith.constant 0 : index
    %0 = vector.load %arg1[%c0, %c0_0] : memref<4x128xf32, #tpu.memory_space<vmem>>, vector<4x128xf32>
    %c0_1 = arith.constant 0 : index
    %c0_2 = arith.constant 0 : index
    %1 = vector.load %arg2[%c0_1, %c0_2] : memref<4x1xf32, #tpu.memory_space<vmem>>, vector<4x1xf32>
    %2 = vector.broadcast %1 : vector<4x1xf32> to vector<4x128xf32>
    %3 = arith.mulf %0, %2 : vector<4x128xf32>
    %cst = arith.constant dense<0.000000e+00> : vector<128xf32>
    %4 = vector.multi_reduction <add>, %3, %cst [0] : vector<4x128xf32> to vector<128xf32>
    %5 = vector.shape_cast %4 : vector<128xf32> to vector<1x128xf32>
    %c0_3 = arith.constant 0 : index
    %6 = memref.load %arg3[%c0_3] : memref<1xf32, #tpu.memory_space<smem>>
    %7 = vector.broadcast %6 : f32 to vector<1x128xf32>
    %8 = arith.addf %5, %7 : vector<1x128xf32>
    %cst_4 = arith.constant 0.000000e+00 : f32
    %cst_5 = arith.constant 1.000000e+00 : f32
    %9 = vector.broadcast %cst_4 : f32 to vector<1x128xf32>
    %10 = arith.maximumf %9, %8 : vector<1x128xf32>
    %11 = vector.broadcast %cst_5 : f32 to vector<1x128xf32>
    %12 = arith.minimumf %11, %10 : vector<1x128xf32>
    %c0_6 = arith.constant 0 : index
    %c0_7 = arith.constant 0 : index
    %13 = vector.load %arg4[%c0_6, %c0_7] : memref<1x128xf32, #tpu.memory_space<vmem>>, vector<1x128xf32>
    tpu.vector_store %arg4[%c0_6, %c0_7], %12 {strides = array<i32>} : memref<1x128xf32, #tpu.memory_space<vmem>>, vector<1x128xf32>,
    return
  }
  func.func @transform_0(%arg0: i32) -> (i32, i32) {
    %c0_i32 = arith.constant 0 : i32
    %c0_i32_0 = arith.constant 0 : i32
    return %c0_i32, %arg0 : i32, i32
  }
  func.func @transform_1(%arg0: i32) -> (i32, i32) {
    %c0_i32 = arith.constant 0 : i32
    %c0_i32_0 = arith.constant 0 : i32
    %c0_i32_1 = arith.constant 0 : i32
    return %c0_i32, %c0_i32_0 : i32, i32
  }
  func.func @transform_2(%arg0: i32) -> i32 {
    %c0_i32 = arith.constant 0 : i32
    %c0_i32_0 = arith.constant 0 : i32
    return %c0_i32 : i32
  }
  func.func @transform_3(%arg0: i32) -> (i32, i32) {
    %c0_i32 = arith.constant 0 : i32
    %c0_i32_0 = arith.constant 0 : i32
    return %c0_i32, %arg0 : i32, i32
  }
}

</mosaic_0001>

<bundles_post_ra>
// kernel: linear_credit_score.1
= control target key start
LH: loop header
LB: loop body
LE: loop exit
PB: predicated region body
PF: predicated region fallthrough
CT: control target
= control target key end

     0   :  { %v43_v0 = vmov 0   ;;  %vm23_vm0 = vcmask 1043456   ;;  %s76_s1 = inlined_call_operand.vmem [shape: f32[4,1], index: 1, kind: input, shape index: {}]   ;;  %s77_s0 = inlined_call_operand.vmem [shape: f32[4,128], index: 0, kind: input, shape index: {}]   ;;  %s78_s2 = inlined_call_operand.<no memory space> [shape: f32[1], index: 2, kind: input, shape index: {}]   ;;  %s79_s3 = inlined_call_operand.vmem [shape: f32[1,128], index: 3, kind: output, shape index: {}]  }
   0x1   :  { %42 = vset.pattern.permute.xlu0 %v43_v0  ;;  %v16_v1 = vld [vmem:[%s76_s1] sm:$0xf]  ;;  %v32_v11 = vstv %s78_s2 }
   0x2   :  { %19 = vperm.xlu0 %42, %v16_v1   ;;  %v15_v2 = vld [vmem:[%s77_s0] sm:$0xf] }
  0x81   :  { %v20_v3 = vpop.permute.xlu0 %19 }
  0x82   :  { %v22_v4 = vmul.f32 %v20_v3, %v15_v2 }
  0x84   :  { %v24_v5 = vsel %vm23_vm0, %v22_v4, 0.0 }
  0x85   :  { %v25_v6 = vrot.slane %v24_v5, 4 }
  0x87   :  { %v26_v7 = vadd.f32 %v25_v6, %v24_v5 }
  0x89   :  { %v27_v8 = vrot.slane %v26_v7, 2 }
  0x8b   :  { %v28_v9 = vadd.f32 %v27_v8, %v26_v7 }
  0x8d   :  { %v29_v10 = vrot.slane %v28_v9, 1 }
  0x8f   :  { %v30_v12 = vadd.f32 %v29_v10, %v28_v9 }
  0x91   :  { %v33_v13 = vadd.f32 %v32_v11, %v30_v12 }
  0x93   :  { %v34_v14 = vmax.f32 %v33_v13, 0.0 }
  0x95   :  { %v35_v15 = vmin.f32 %v34_v14, 1.0 }
  0x97   :  { %36 = vst [vmem:[%s79_s3] sm:$0x1] %v35_v15 }

</bundles_post_ra>
